<compile_context>
chip_gen: v7x
topology: tpu7x:2x2x1
jax: 0.10.0
libtpu: 0.0.40
codegen_flags: <defaults>
</compile_context>

<pallas_src>
import math

import jax
import jax.numpy as jnp
from jax.experimental import pallas as pl
from jax.experimental.pallas import tpu as pltpu


def _round_up(x, m):
    return (x + m - 1) // m * m


def _mlp_head_kernel(z_ref, w1_ref, b1_ref, w2_ref, b2_ref, o_ref, acc_ref):
    """Fused two-layer ReLU MLP over stacked [x; y] rows.

    Grid: (row_tiles, k_tiles); axis 1 is the fc1 reduction (D) axis.

    z_ref  : (tm, tk)   activation tile
    w1_ref : (tk, H)    fc1 weight tile, pre-transposed (in x out)
    b1_ref : (1,  H)    fc1 bias (f32)
    w2_ref : (H,  H)    fc2 weight, pre-transposed
    b2_ref : (1,  H)    fc2 bias (f32)
    o_ref  : (tm, H)    output tile
    acc_ref: (tm, H)    f32 accumulator scratch (persists across k)
    """
    k = pl.program_id(1)

    @pl.when(k == 0)
    def _init():
        # Seed the accumulator with the fc1 bias: removes the (tm, H)
        # broadcast + add from the epilogue.
        acc_ref[...] = jnp.broadcast_to(b1_ref[...], acc_ref.shape)

    # fc1 partial product on the MXU (plain contraction, no transpose).
    acc_ref[...] += jnp.dot(z_ref[...], w1_ref[...],
                            preferred_element_type=jnp.float32)

    @pl.when(k == pl.num_programs(1) - 1)
    def _epilogue():
        h = jnp.maximum(acc_ref[...], 0.0).astype(w2_ref.dtype)
        o = jnp.dot(h, w2_ref[...], preferred_element_type=jnp.float32)
        o_ref[...] = jnp.maximum(o + b2_ref[...], 0.0).astype(o_ref.dtype)


def _vmem_budget_bytes():
    """Generation-aware VMEM budget (leave ~25% headroom for Mosaic)."""
    try:
        phys = pltpu.get_tpu_info().vmem_capacity_bytes
    except Exception:
        phys = 64 << 20          # be conservative (v7x per-TC size)
    return (phys * 3) // 4       # ~48 MiB on v7x, ~96 MiB on v5e/v6e


def _pick_tiles(rows, d_p, h_p, row_tile, k_tile, cdt_bytes, out_bytes,
                budget):
    """Returns (tm, rows_p, tk, d_pad, w1_resident)."""
    # ---- row tile ----------------------------------------------------------
    rows_8 = _round_up(rows, 8)
    tm = min(row_tile, rows_8)
    if rows_8 // tm < 2 and rows_8 >= 16:
        # Keep >= 2 row tiles so the "parallel" axis can split across the two
        # TensorCores of a v7x chip (free on single-TC v5e/v6e).
        tm = _round_up(rows_8, 16) // 2
    rows_p = _round_up(rows_8, tm)

    # VMEM not depending on tk: W2 + biases (single buffer), f32 accumulator,
    # double-buffered output tile.
    fixed = h_p * h_p * cdt_bytes + 2 * h_p * 4
    fixed += tm * h_p * 4 + 2 * tm * h_p * out_bytes

    # ---- k tile ------------------------------------------------------------
    if k_tile is not None:                          # explicit override
        tk = min(_round_up(k_tile, 128), d_p)
        d_pad = _round_up(d_p, tk)
        return tm, rows_p, tk, d_pad, tk == d_pad

    # Prefer a full-D resident fc1 weight (single buffer, one HBM read for
    # the whole kernel) plus a double-buffered activation tile.
    full = fixed + d_p * h_p * cdt_bytes + 2 * tm * d_p * cdt_bytes
    if full <= budget:
        return tm, rows_p, d_p, d_p, True

    # Otherwise: largest tk dividing d_p (multiple of 128 -> no zero-column
    # waste on the reduction axis) that fits with default double buffering.
    nk = d_p // 128
    best = 128
    for m in range(1, nk + 1):
        if nk % m:
            continue
        tk = 128 * m
        need = fixed + 2 * tk * h_p * cdt_bytes + 2 * tm * tk * cdt_bytes
        if need <= budget:
            best = tk
    return tm, rows_p, best, d_p, False


def roi_2mlp_head_co_forward(x_pooled, y_pooled, fc1_w, fc1_b, fc2_w, fc2_b,
                             *, compute_dtype=jnp.bfloat16, out_dtype=None,
                             row_tile=256, k_tile=None,
                             vmem_limit_bytes=None, use_buffered_hints=True):
    """x_pooled, y_pooled: (N, C, R, R) pooled ROI features (post roi_xform).

    fc1_w: (H, C*R*R)  PyTorch (out, in) layout.     fc1_b: (H,)
    fc2_w: (H, H)                                     fc2_b: (H,)
    Returns (x_out, y_out), each (N, H).
    """
    n = x_pooled.shape[0]
    d = x_pooled.shape[1] * x_pooled.shape[2] * x_pooled.shape[3]
    hdim = fc1_w.shape[0]
    if out_dtype is None:
        # Pass out_dtype=jnp.bfloat16 to halve output writeback if the
        # downstream consumer tolerates bf16.
        out_dtype = x_pooled.dtype

    cdt_bytes = jnp.dtype(compute_dtype).itemsize
    out_bytes = jnp.dtype(out_dtype).itemsize
    if vmem_limit_bytes is None:
        vmem_limit_bytes = _vmem_budget_bytes()

    rows = 2 * n
    d_p = _round_up(d, 128)
    h_p = _round_up(hdim, 128)

    tm, rows_p, tk, d_pad, w1_resident = _pick_tiles(
        rows, d_p, h_p, row_tile, k_tile, cdt_bytes, out_bytes,
        vmem_limit_bytes)

    # Fuse x and y (shared weights) into one operand.  Cast BEFORE the concat
    # so the wrapper-side copy of the (2N, D) activations moves compute-dtype
    # (bf16) bytes, not f32.
    zx = x_pooled.reshape(n, d).astype(compute_dtype)
    zy = y_pooled.reshape(n, d).astype(compute_dtype)
    z = jnp.concatenate([zx, zy], axis=0)
    if rows_p != rows or d_pad != d:
        z = jnp.pad(z, ((0, rows_p - rows), (0, d_pad - d)))

    # Pre-transpose the weights once at trace time so the kernel contracts
    # the RHS sublane dim (plain z @ W1t / h @ W2t).
    w1t = fc1_w.T.astype(compute_dtype)                       # (D, H)
    if d_pad != d or h_p != hdim:
        w1t = jnp.pad(w1t, ((0, d_pad - d), (0, h_p - hdim)))
    w2t = fc2_w.T.astype(compute_dtype)                       # (H, H)
    if h_p != hdim:
        w2t = jnp.pad(w2t, ((0, h_p - hdim), (0, h_p - hdim)))
    b1 = fc1_b.astype(jnp.float32)
    b2 = fc2_b.astype(jnp.float32)
    if h_p != hdim:
        b1 = jnp.pad(b1, (0, h_p - hdim))
        b2 = jnp.pad(b2, (0, h_p - hdim))
    b1 = b1.reshape(1, h_p)
    b2 = b2.reshape(1, h_p)

    grid = (rows_p // tm, d_pad // tk)

    def _build(buffered):
        def spec(shape, index_map, single_buffer):
            if buffered and single_buffer:
                return pl.BlockSpec(shape, index_map,
                                    pipeline_mode=pl.Buffered(1))
            return pl.BlockSpec(shape, index_map)

        in_specs = [
            pl.BlockSpec((tm, tk), lambda i, k: (i, k)),            # z
            spec((tk, h_p), lambda i, k: (k, 0), w1_resident),      # fc1 W^T
            spec((1, h_p), lambda i, k: (0, 0), True),              # fc1 bias
            spec((h_p, h_p), lambda i, k: (0, 0), True),            # fc2 W^T
            spec((1, h_p), lambda i, k: (0, 0), True),              # fc2 bias
        ]
        return pl.pallas_call(
            _mlp_head_kernel,
            out_shape=jax.ShapeDtypeStruct((rows_p, h_p), out_dtype),
            grid_spec=pltpu.PrefetchScalarGridSpec(
                num_scalar_prefetch=0,
                grid=grid,
                in_specs=in_specs,
                out_specs=pl.BlockSpec((tm, h_p), lambda i, k: (i, 0)),
                scratch_shapes=[pltpu.VMEM((tm, h_p), jnp.float32)],
            ),
            compiler_params=pltpu.CompilerParams(
                dimension_semantics=("parallel", "arbitrary"),
                vmem_limit_bytes=int(vmem_limit_bytes),
            ),
        )

    if use_buffered_hints:
        try:
            out = _build(True)(z, w1t, b1, w2t, b2)
        except Exception:
            # Fallback for jax versions without single-buffer pipeline_mode
            # support: default double-buffered specs (correctness first).
            out = _build(False)(z, w1t, b1, w2t, b2)
    else:
        out = _build(False)(z, w1t, b1, w2t, b2)

    x_out = out[:n, :hdim]
    y_out = out[n:rows, :hdim]
    return x_out, y_out


def _xavier_uniform(key, shape):
    # Detectron XavierFill == xavier uniform with gain 1; weight is (out, in).
    fan_out, fan_in = shape
    bound = math.sqrt(6.0 / (fan_in + fan_out))
    return jax.random.uniform(key, shape, jnp.float32, -bound, bound)


def _reference(x_pooled, y_pooled, fc1_w, fc1_b, fc2_w, fc2_b):
    def two_layer(t):
        h = jnp.maximum(t.reshape(t.shape[0], -1) @ fc1_w.T + fc1_b, 0.0)
        return jnp.maximum(h @ fc2_w.T + fc2_b, 0.0)

    return two_layer(x_pooled), two_layer(y_pooled)


if __name__ == "__main__":
    # Small shapes consistent with the module:
    #   dim_in=4 channels, ROI_XFORM_RESOLUTION=8 -> fc1 in_features = 256
    #   hidden_dim (MLP_HEAD_DIM) = 128, N = 16 ROIs.
    N, C, R, H = 16, 4, 8, 128
    D = C * R * R

    key = jax.random.PRNGKey(0)
    kx, ky, k1, k2 = jax.random.split(key, 4)

    # Already-pooled ROI features (output of the external roi_xform), NCHW.
    x_pooled = jax.random.normal(kx, (N, C, R, R), jnp.float32)
    y_pooled = jax.random.normal(ky, (N, C, R, R), jnp.float32)

    # Deterministic parameter init: XavierFill weights, zero biases.
    fc1_w = _xavier_uniform(k1, (H, D))
    fc1_b = jnp.zeros((H,), jnp.float32)
    fc2_w = _xavier_uniform(k2, (H, H))
    fc2_b = jnp.zeros((H,), jnp.float32)

    # Pure-JAX f32 reference (kernel computes in bf16 with f32 accumulation,
    # so tolerances are loosened accordingly).
    x_ref, y_ref = _reference(x_pooled, y_pooled, fc1_w, fc1_b, fc2_w, fc2_b)

    # 1) Auto-tiled path: full-D resident fc1 weight, single reduction step,
    #    two row tiles on the parallel axis.
    x_out, y_out = roi_2mlp_head_co_forward(
        x_pooled, y_pooled, fc1_w, fc1_b, fc2_w, fc2_b)
    jax.block_until_ready((x_out, y_out))
    assert x_out.shape == (N, H) and y_out.shape == (N, H)
    assert jnp.allclose(x_out, x_ref, atol=5e-2, rtol=5e-2)
    assert jnp.allclose(y_out, y_ref, atol=5e-2, rtol=5e-2)

    # 2) Forced small tiles to exercise the multi-step fc1 reduction
    #    (accumulator) path.  Test-only tiles, not for benchmarking.
    x_out2, y_out2 = roi_2mlp_head_co_forward(
        x_pooled, y_pooled, fc1_w, fc1_b, fc2_w, fc2_b,
        row_tile=16, k_tile=128)
    jax.block_until_ready((x_out2, y_out2))
    assert jnp.allclose(x_out2, x_ref, atol=5e-2, rtol=5e-2)
    assert jnp.allclose(y_out2, y_ref, atol=5e-2, rtol=5e-2)

    print("KERNEL_OK")
</pallas_src>

<mosaic_0001>
module attributes {stable_mosaic.version = 11 : i64} {
  func.func @_mlp_head_kernel(%arg0: i32, %arg1: i32, %arg2: memref<16x256xbf16, #tpu.memory_space<vmem>>, %arg3: memref<256x128xbf16, #tpu.memory_space<vmem>>, %arg4: memref<1x128xf32, #tpu.memory_space<vmem>>, %arg5: memref<128x128xbf16, #tpu.memory_space<vmem>>, %arg6: memref<1x128xf32, #tpu.memory_space<vmem>>, %arg7: memref<16x128xf32, #tpu.memory_space<vmem>>, %arg8: memref<16x128xf32, #tpu.memory_space<vmem>>) attributes {dimension_semantics = [#tpu.dimension_semantics<parallel>, #tpu.dimension_semantics<arbitrary>], iteration_bounds = array<i64: 2, 1>, scalar_prefetch = 0 : i64, scratch_operands = 1 : i64, tpu.core_type = #tpu.core_type<tc>, window_params = [{transform_indices = @transform_0, window_bounds = array<i64: 16, 256>}, {pipeline_mode = #tpu.pipeline_mode<synchronous>, transform_indices = @transform_1, window_bounds = array<i64: 256, 128>}, {pipeline_mode = #tpu.pipeline_mode<synchronous>, transform_indices = @transform_2, window_bounds = array<i64: 1, 128>}, {pipeline_mode = #tpu.pipeline_mode<synchronous>, transform_indices = @transform_3, window_bounds = array<i64: 128, 128>}, {pipeline_mode = #tpu.pipeline_mode<synchronous>, transform_indices = @transform_4, window_bounds = array<i64: 1, 128>}, {transform_indices = @transform_5, window_bounds = array<i64: 16, 128>}]} {
    %c0_i32 = arith.constant 0 : i32
    %0 = arith.cmpi eq, %arg1, %c0_i32 : i32
    %1 = arith.extui %0 : i1 to i32
    %c0_i32_0 = arith.constant 0 : i32
    %2 = arith.cmpi ne, %1, %c0_i32_0 : i32
    scf.if %2 {
      %c0_10 = arith.constant 0 : index
      %c0_11 = arith.constant 0 : index
      %12 = vector.load %arg4[%c0_10, %c0_11] : memref<1x128xf32, #tpu.memory_space<vmem>>, vector<1x128xf32>
      %13 = vector.shape_cast %12 : vector<1x128xf32> to vector<1x128xf32>
      %14 = vector.broadcast %13 : vector<1x128xf32> to vector<16x128xf32>
      %c0_12 = arith.constant 0 : index
      %c0_13 = arith.constant 0 : index
      %15 = vector.load %arg8[%c0_12, %c0_13] : memref<16x128xf32, #tpu.memory_space<vmem>>, vector<16x128xf32>
      tpu.vector_store %arg8[%c0_12, %c0_13], %14 {strides = array<i32>} : memref<16x128xf32, #tpu.memory_space<vmem>>, vector<16x128xf32>,
    } else {
    }
    %c0 = arith.constant 0 : index
    %c0_1 = arith.constant 0 : index
    %3 = vector.load %arg8[%c0, %c0_1] : memref<16x128xf32, #tpu.memory_space<vmem>>, vector<16x128xf32>
    %c0_2 = arith.constant 0 : index
    %c0_3 = arith.constant 0 : index
    %4 = vector.load %arg2[%c0_2, %c0_3] : memref<16x256xbf16, #tpu.memory_space<vmem>>, vector<16x256xbf16>
    %c0_4 = arith.constant 0 : index
    %c0_5 = arith.constant 0 : index
    %5 = vector.load %arg3[%c0_4, %c0_5] : memref<256x128xbf16, #tpu.memory_space<vmem>>, vector<256x128xbf16>
    %cst = arith.constant dense<0.000000e+00> : vector<16x128xf32>
    %6 = tpu.matmul %4, %5, %cst {dimension_numbers = #tpu.dot_dimension_numbers<[1], [0], [0], [1], [0, 0, 1, 1], [], []>} : vector<16x256xbf16>, vector<256x128xbf16>, vector<16x128xf32> -> vector<16x128xf32>
    %7 = arith.addf %3, %6 : vector<16x128xf32>
    %c0_6 = arith.constant 0 : index
    %c0_7 = arith.constant 0 : index
    %8 = vector.load %arg8[%c0_6, %c0_7] : memref<16x128xf32, #tpu.memory_space<vmem>>, vector<16x128xf32>
    tpu.vector_store %arg8[%c0_6, %c0_7], %7 {strides = array<i32>} : memref<16x128xf32, #tpu.memory_space<vmem>>, vector<16x128xf32>,
    %c0_i32_8 = arith.constant 0 : i32
    %9 = arith.cmpi eq, %arg1, %c0_i32_8 : i32
    %10 = arith.extui %9 : i1 to i32
    %c0_i32_9 = arith.constant 0 : i32
    %11 = arith.cmpi ne, %10, %c0_i32_9 : i32
    scf.if %11 {
      %c0_10 = arith.constant 0 : index
      %c0_11 = arith.constant 0 : index
      %12 = vector.load %arg8[%c0_10, %c0_11] : memref<16x128xf32, #tpu.memory_space<vmem>>, vector<16x128xf32>
      %cst_12 = arith.constant 0.000000e+00 : f32
      %13 = vector.broadcast %cst_12 : f32 to vector<16x128xf32>
      %14 = arith.maximumf %12, %13 : vector<16x128xf32>
      %15 = arith.truncf %14 : vector<16x128xf32> to vector<16x128xbf16>
      %c0_13 = arith.constant 0 : index
      %c0_14 = arith.constant 0 : index
      %16 = vector.load %arg5[%c0_13, %c0_14] : memref<128x128xbf16, #tpu.memory_space<vmem>>, vector<128x128xbf16>
      %cst_15 = arith.constant dense<0.000000e+00> : vector<16x128xf32>
      %17 = tpu.matmul %15, %16, %cst_15 {dimension_numbers = #tpu.dot_dimension_numbers<[1], [0], [0], [1], [0, 0, 1, 1], [], []>} : vector<16x128xbf16>, vector<128x128xbf16>, vector<16x128xf32> -> vector<16x128xf32>
      %c0_16 = arith.constant 0 : index
      %c0_17 = arith.constant 0 : index
      %18 = vector.load %arg6[%c0_16, %c0_17] : memref<1x128xf32, #tpu.memory_space<vmem>>, vector<1x128xf32>
      %19 = vector.broadcast %18 : vector<1x128xf32> to vector<16x128xf32>
      %20 = arith.addf %17, %19 : vector<16x128xf32>
      %cst_18 = arith.constant 0.000000e+00 : f32
      %21 = vector.broadcast %cst_18 : f32 to vector<16x128xf32>
      %22 = arith.maximumf %20, %21 : vector<16x128xf32>
      %c0_19 = arith.constant 0 : index
      %c0_20 = arith.constant 0 : index
      %23 = vector.load %arg7[%c0_19, %c0_20] : memref<16x128xf32, #tpu.memory_space<vmem>>, vector<16x128xf32>
      tpu.vector_store %arg7[%c0_19, %c0_20], %22 {strides = array<i32>} : memref<16x128xf32, #tpu.memory_space<vmem>>, vector<16x128xf32>,
    } else {
    }
    return
  }
  func.func @transform_0(%arg0: i32, %arg1: i32) -> (i32, i32) {
    %c0_i32 = arith.constant 0 : i32
    return %arg0, %arg1 : i32, i32
  }
  func.func @transform_1(%arg0: i32, %arg1: i32) -> (i32, i32) {
    %c0_i32 = arith.constant 0 : i32
    %c0_i32_0 = arith.constant 0 : i32
    return %arg1, %c0_i32 : i32, i32
  }
  func.func @transform_2(%arg0: i32, %arg1: i32) -> (i32, i32) {
    %c0_i32 = arith.constant 0 : i32
    %c0_i32_0 = arith.constant 0 : i32
    %c0_i32_1 = arith.constant 0 : i32
    return %c0_i32, %c0_i32_0 : i32, i32
  }
  func.func @transform_3(%arg0: i32, %arg1: i32) -> (i32, i32) {
    %c0_i32 = arith.constant 0 : i32
    %c0_i32_0 = arith.constant 0 : i32
    %c0_i32_1 = arith.constant 0 : i32
    return %c0_i32, %c0_i32_0 : i32, i32
  }
  func.func @transform_4(%arg0: i32, %arg1: i32) -> (i32, i32) {
    %c0_i32 = arith.constant 0 : i32
    %c0_i32_0 = arith.constant 0 : i32
    %c0_i32_1 = arith.constant 0 : i32
    return %c0_i32, %c0_i32_0 : i32, i32
  }
  func.func @transform_5(%arg0: i32, %arg1: i32) -> (i32, i32) {
    %c0_i32 = arith.constant 0 : i32
    %c0_i32_0 = arith.constant 0 : i32
    return %arg0, %c0_i32 : i32, i32
  }
}

module attributes {stable_mosaic.version = 11 : i64} {
  func.func @_mlp_head_kernel(%arg0: i32, %arg1: i32, %arg2: memref<16x256xbf16, #tpu.memory_space<vmem>>, %arg3: memref<256x128xbf16, #tpu.memory_space<vmem>>, %arg4: memref<1x128xf32, #tpu.memory_space<vmem>>, %arg5: memref<128x128xbf16, #tpu.memory_space<vmem>>, %arg6: memref<1x128xf32, #tpu.memory_space<vmem>>, %arg7: memref<16x128xf32, #tpu.memory_space<vmem>>, %arg8: memref<16x128xf32, #tpu.memory_space<vmem>>) attributes {dimension_semantics = [#tpu.dimension_semantics<parallel>, #tpu.dimension_semantics<arbitrary>], iteration_bounds = array<i64: 2, 1>, scalar_prefetch = 0 : i64, scratch_operands = 1 : i64, tpu.core_type = #tpu.core_type<tc>, window_params = [{transform_indices = @transform_0, window_bounds = array<i64: 16, 256>}, {transform_indices = @transform_1, window_bounds = array<i64: 256, 128>}, {pipeline_mode = #tpu.pipeline_mode<synchronous>, transform_indices = @transform_2, window_bounds = array<i64: 1, 128>}, {pipeline_mode = #tpu.pipeline_mode<synchronous>, transform_indices = @transform_3, window_bounds = array<i64: 128, 128>}, {pipeline_mode = #tpu.pipeline_mode<synchronous>, transform_indices = @transform_4, window_bounds = array<i64: 1, 128>}, {transform_indices = @transform_5, window_bounds = array<i64: 16, 128>}]} {
    %c0_i32 = arith.constant 0 : i32
    %0 = arith.cmpi eq, %arg1, %c0_i32 : i32
    %1 = arith.extui %0 : i1 to i32
    %c0_i32_0 = arith.constant 0 : i32
    %2 = arith.cmpi ne, %1, %c0_i32_0 : i32
    scf.if %2 {
      %c0_10 = arith.constant 0 : index
      %c0_11 = arith.constant 0 : index
      %12 = vector.load %arg4[%c0_10, %c0_11] : memref<1x128xf32, #tpu.memory_space<vmem>>, vector<1x128xf32>
      %13 = vector.shape_cast %12 : vector<1x128xf32> to vector<1x128xf32>
      %14 = vector.broadcast %13 : vector<1x128xf32> to vector<16x128xf32>
      %c0_12 = arith.constant 0 : index
      %c0_13 = arith.constant 0 : index
      %15 = vector.load %arg8[%c0_12, %c0_13] : memref<16x128xf32, #tpu.memory_space<vmem>>, vector<16x128xf32>
      tpu.vector_store %arg8[%c0_12, %c0_13], %14 {strides = array<i32>} : memref<16x128xf32, #tpu.memory_space<vmem>>, vector<16x128xf32>,
    } else {
    }
    %c0 = arith.constant 0 : index
    %c0_1 = arith.constant 0 : index
    %3 = vector.load %arg8[%c0, %c0_1] : memref<16x128xf32, #tpu.memory_space<vmem>>, vector<16x128xf32>
    %c0_2 = arith.constant 0 : index
    %c0_3 = arith.constant 0 : index
    %4 = vector.load %arg2[%c0_2, %c0_3] : memref<16x256xbf16, #tpu.memory_space<vmem>>, vector<16x256xbf16>
    %c0_4 = arith.constant 0 : index
    %c0_5 = arith.constant 0 : index
    %5 = vector.load %arg3[%c0_4, %c0_5] : memref<256x128xbf16, #tpu.memory_space<vmem>>, vector<256x128xbf16>
    %cst = arith.constant dense<0.000000e+00> : vector<16x128xf32>
    %6 = tpu.matmul %4, %5, %cst {dimension_numbers = #tpu.dot_dimension_numbers<[1], [0], [0], [1], [0, 0, 1, 1], [], []>} : vector<16x256xbf16>, vector<256x128xbf16>, vector<16x128xf32> -> vector<16x128xf32>
    %7 = arith.addf %3, %6 : vector<16x128xf32>
    %c0_6 = arith.constant 0 : index
    %c0_7 = arith.constant 0 : index
    %8 = vector.load %arg8[%c0_6, %c0_7] : memref<16x128xf32, #tpu.memory_space<vmem>>, vector<16x128xf32>
    tpu.vector_store %arg8[%c0_6, %c0_7], %7 {strides = array<i32>} : memref<16x128xf32, #tpu.memory_space<vmem>>, vector<16x128xf32>,
    %c0_i32_8 = arith.constant 0 : i32
    %9 = arith.cmpi eq, %arg1, %c0_i32_8 : i32
    %10 = arith.extui %9 : i1 to i32
    %c0_i32_9 = arith.constant 0 : i32
    %11 = arith.cmpi ne, %10, %c0_i32_9 : i32
    scf.if %11 {
      %c0_10 = arith.constant 0 : index
      %c0_11 = arith.constant 0 : index
      %12 = vector.load %arg8[%c0_10, %c0_11] : memref<16x128xf32, #tpu.memory_space<vmem>>, vector<16x128xf32>
      %cst_12 = arith.constant 0.000000e+00 : f32
      %13 = vector.broadcast %cst_12 : f32 to vector<16x128xf32>
      %14 = arith.maximumf %12, %13 : vector<16x128xf32>
      %15 = arith.truncf %14 : vector<16x128xf32> to vector<16x128xbf16>
      %c0_13 = arith.constant 0 : index
      %c0_14 = arith.constant 0 : index
      %16 = vector.load %arg5[%c0_13, %c0_14] : memref<128x128xbf16, #tpu.memory_space<vmem>>, vector<128x128xbf16>
      %cst_15 = arith.constant dense<0.000000e+00> : vector<16x128xf32>
      %17 = tpu.matmul %15, %16, %cst_15 {dimension_numbers = #tpu.dot_dimension_numbers<[1], [0], [0], [1], [0, 0, 1, 1], [], []>} : vector<16x128xbf16>, vector<128x128xbf16>, vector<16x128xf32> -> vector<16x128xf32>
      %c0_16 = arith.constant 0 : index
      %c0_17 = arith.constant 0 : index
      %18 = vector.load %arg6[%c0_16, %c0_17] : memref<1x128xf32, #tpu.memory_space<vmem>>, vector<1x128xf32>
      %19 = vector.broadcast %18 : vector<1x128xf32> to vector<16x128xf32>
      %20 = arith.addf %17, %19 : vector<16x128xf32>
      %cst_18 = arith.constant 0.000000e+00 : f32
      %21 = vector.broadcast %cst_18 : f32 to vector<16x128xf32>
      %22 = arith.maximumf %20, %21 : vector<16x128xf32>
      %c0_19 = arith.constant 0 : index
      %c0_20 = arith.constant 0 : index
      %23 = vector.load %arg7[%c0_19, %c0_20] : memref<16x128xf32, #tpu.memory_space<vmem>>, vector<16x128xf32>
      tpu.vector_store %arg7[%c0_19, %c0_20], %22 {strides = array<i32>} : memref<16x128xf32, #tpu.memory_space<vmem>>, vector<16x128xf32>,
    } else {
    }
    return
  }
  func.func @transform_0(%arg0: i32, %arg1: i32) -> (i32, i32) {
    %c0_i32 = arith.constant 0 : i32
    return %arg0, %arg1 : i32, i32
  }
  func.func @transform_1(%arg0: i32, %arg1: i32) -> (i32, i32) {
    %c0_i32 = arith.constant 0 : i32
    %c0_i32_0 = arith.constant 0 : i32
    return %arg1, %c0_i32 : i32, i32
  }
  func.func @transform_2(%arg0: i32, %arg1: i32) -> (i32, i32) {
    %c0_i32 = arith.constant 0 : i32
    %c0_i32_0 = arith.constant 0 : i32
    %c0_i32_1 = arith.constant 0 : i32
    return %c0_i32, %c0_i32_0 : i32, i32
  }
  func.func @transform_3(%arg0: i32, %arg1: i32) -> (i32, i32) {
    %c0_i32 = arith.constant 0 : i32
    %c0_i32_0 = arith.constant 0 : i32
    %c0_i32_1 = arith.constant 0 : i32
    return %c0_i32, %c0_i32_0 : i32, i32
  }
  func.func @transform_4(%arg0: i32, %arg1: i32) -> (i32, i32) {
    %c0_i32 = arith.constant 0 : i32
    %c0_i32_0 = arith.constant 0 : i32
    %c0_i32_1 = arith.constant 0 : i32
    return %c0_i32, %c0_i32_0 : i32, i32
  }
  func.func @transform_5(%arg0: i32, %arg1: i32) -> (i32, i32) {
    %c0_i32 = arith.constant 0 : i32
    %c0_i32_0 = arith.constant 0 : i32
    return %arg0, %c0_i32 : i32, i32
  }
}

</mosaic_0001>

<bundles_post_ra>
// kernel: tpu_custom_call.1
= control target key start
LH: loop header
LB: loop body
LE: loop exit
PB: predicated region body
PF: predicated region fallthrough
CT: control target
= control target key end

     0   :  { %10 = vsyncpa [#allocation4], 0  ;;  %s1450_s0 = inlined_call_operand.hbm [shape: bf16[32,256], index: 0, kind: input, shape index: {}]   ;;  %s1451_s1 = inlined_call_operand.hbm [shape: bf16[256,128], index: 1, kind: input, shape index: {}]   ;;  %s1452_s2 = inlined_call_operand.vmem [shape: f32[1,128], index: 2, kind: input, shape index: {}]   ;;  %s1453_s3 = inlined_call_operand.hbm [shape: bf16[128,128], index: 3, kind: input, shape index: {}]   ;;  %s1454_s4 = inlined_call_operand.vmem [shape: f32[1,128], index: 4, kind: input, shape index: {}]   ;;  %s1455_s5 = inlined_call_operand.hbm [shape: f32[32,128], index: 5, kind: output, shape index: {}]  }
   0x1   :  { %12 = vsyncpa [#allocation4 + $0x1], 0 }
   0x2   :  { %13 = vsyncpa [#allocation7], 0 }
   0x3   :  { %14 = vsyncpa [#allocation5], 0 }
   0x4   :  { %16 = vsyncpa [#allocation5 + $0x1], 0  ;;  %s1181_s18 = smov 0   ;;  %s1183_s19 = smov 0  }
   0x5   :  { %s1185_s20 = smov 0   ;;  %s1187_s21 = smov 0  }
   0x6   :  { %s1189_s22 = smov 0   ;;  %s1191_s23 = smov 0  }
   0x7 LB: > { %s745_s24 = sadd.s32 4294967295, %s1137_s23   ;;  %s746_s25 = sadd.s32 4294967294, %s1137_s23   ;;  %s1137_s23 = sphi %s1191_s23, %s22_s23   ;;  %s1133_s22 = sphi %s1189_s22, %s1477_s22   ;;  %s1129_s21 = sphi %s1187_s21, %s1476_s21   ;;  %s1125_s20 = sphi %s1185_s20, %s1475_s20   ;;  %s1121_s19 = sphi %s1183_s19, %s1474_s19   ;;  %s1117_s18 = sphi %s1181_s18, %s1473_s18  }
   0x8   : > { %p56_p0 = scmp.ne.s32.totalorder %s1121_s19, %s1117_s18  ;;  %p1215_p1 = scmp.eq.s32.totalorder %s745_s24, 0 }
   0x9   : > { %p1219_p2 = scmp.eq.s32.totalorder %s745_s24, 1  ;;  %p175_p3 = scmp.eq.s32.totalorder %s746_s25, 1 }
   0xa   : > { %s1460_s26 = scalar_select %p1215_p1, 1, 0 }
   0xb   : > { %p1225_p4 = por %p1215_p1, %p56_p0  ;;  %p747_p5 = scmp.ge.s32.totalorder %s1137_s23, 1 }
   0xc   : > { %p1230_p6 = por %p175_p3, %p56_p0  ;;  %p182_p7 = scmp.lt.s32.totalorder %s1137_s23, 3 }
   0xd   : > { %s1462_s28 = scalar_select %p1225_p4, 1, 0 }
   0xe   : > { %s1463_s29 = scalar_select %p1230_p6, 1, 0 }
   0xf   : > { %p1235_p8 = pnand %p747_p5, %p182_p7  ;;  %s1139_s6 = smov [#allocation6]  }
  0x10   : > { %s197_s7 = sshll.u32 %s1139_s6, 4  ;;  %s1140_s9 = smov [#allocation8]   ;;  %s1239_s7 = int_to_ptr.vmem [resolvable:$true] %s197_s7 }
  0x11   : > { %p859_p9 = pneg %p1235_p8  ;;  %s213_s10 = sshll.u32 %s1140_s9, 4  ;;  %s1250_s10 = int_to_ptr.vmem [resolvable:$true] %s213_s10 }
  0x12   : > { %s965_s13 = scalar_lea.hbm %s1451_s1, 2048 }
  0x13   : > { %p1246_p11 = pnand %p859_p9, %p1215_p1  ;;  %p966_p12 = scmp.ne.s32.totalorder %s1451_s1, %s965_s13 }
  0x14   : > { %p972_p5 = scmp.lt.u32.totalorder %s965_s13, %s1451_s1 }
  0x15   : > { %p967_p13 = pneg %p1246_p11 }
  0x17   : > { %p968_p0 = pnand %p967_p13, %p966_p12 }
  0x19   : > { %p969_p3 = pneg %p968_p0 }
  0x1b   : > { %p974_p7 = pnand %p972_p5, %p969_p3 }
  0x1d   : > { %977 = shalt.err (!%p974_p7)
}
  0x1e   : > { %s978_s24 = scalar_lea.vmem %s1239_s7, 2048  ;;  %p986_p1 = scmp.lt.s32.totalorder %s1239_s7, %s1239_s7 }
  0x1f   : > { %p979_p9 = scmp.ne.s32.totalorder %s1239_s7, %s978_s24  ;;  %p987_p12 = scmp.lt.s32.totalorder %s978_s24, %s978_s24 }
  0x21   : > { %p981_p10 = pnand %p979_p9, %p967_p13  ;;  %p988_p0 = por %p987_p12, %p986_p1 }
  0x23   : > { %p982_p6 = pneg %p981_p10 }
  0x25   : > { %p989_p4 = pnand %p988_p0, %p982_p6 }
  0x27   : > { %992 = shalt.err (!%p989_p4)
}
  0x28   : > { %s1141_s25 = smov 64   ;;  %s1142_s6 = smov 4  }
  0x29   : > { %862 = dma.hbm_to_vmem [thread:$0]  (!%p1246_p11), %s1451_s1, 2048, %s1239_s7, [#allocation7], %s1141_s25, %s1141_s25, %s1142_s6  }
  0x2a   : > { %s993_s14 = scalar_lea.hbm %s1453_s3, 1024 }
  0x2b   : > { %p994_p1 = scmp.ne.s32.totalorder %s1453_s3, %s993_s14  ;;  %p1000_p10 = scmp.lt.u32.totalorder %s993_s14, %s1453_s3 }
  0x2d   : > { %p996_p4 = pnand %p994_p1, %p967_p13 }
  0x2f   : > { %p997_p6 = pneg %p996_p4 }
  0x31   : > { %p1002_p3 = pnand %p1000_p10, %p997_p6 }
  0x33   : > { %1005 = shalt.err (!%p1002_p3)
}
  0x34   : > { %s1006_s7 = scalar_lea.vmem %s1250_s10, 1024  ;;  %p1014_p12 = scmp.lt.s32.totalorder %s1250_s10, %s1250_s10 }
  0x35   : > { %p1007_p5 = scmp.ne.s32.totalorder %s1250_s10, %s1006_s7  ;;  %p1015_p0 = scmp.lt.s32.totalorder %s1006_s7, %s1006_s7 }
  0x37   : > { %p1009_p7 = pnand %p1007_p5, %p967_p13  ;;  %p1016_p1 = por %p1015_p0, %p1014_p12 }
  0x39   : > { %p1010_p9 = pneg %p1009_p7 }
  0x3b   : > { %p1017_p4 = pnand %p1016_p1, %p1010_p9 }
  0x3d   : > { %1020 = shalt.err (!%p1017_p4)
}
  0x3e   : > { %865 = dma.hbm_to_vmem [thread:$0]  (!%p1246_p11), %s1453_s3, 1024, %s1250_s10, [#allocation7], %s1141_s25, %s1141_s25, %s1142_s6  }
  0x3f   : > { %s34_s12 = sadd.s32 1, %s1133_s22  ;;  %s43_s13 = sadd.s32 1, %s1125_s20 }
  0x40   : > { %p36_p13 = scmp.ge.s32.totalorder %s34_s12, 2  ;;  %p50_p6 = scmp.ne.s32.totalorder %s1125_s20, %s1121_s19 }
  0x41   : > { %p51_p10 = scmp.eq.s32.totalorder %s1137_s23, 0  ;;  %p876_p3 = scmp.lt.s32.totalorder %s1137_s23, 2 }
  0x42   : > { %s1479_s12 = smov (%p36_p13, %s34_s12), 0  ;;  %p1314_p7 = por %p1219_p2, %p50_p6 }
  0x43   : > { %p52_p5 = por %p51_p10, %p50_p6  ;;  %s38_s14 = ssub.s32 %s1133_s22, %s1479_s12 }
  0x44   : > { %s1466_s8 = scalar_select %p1314_p7, 1, 0 }
  0x45   : > { %s230_s15 = sand.u32 1, %s1125_s20   ;;  %p41_p9 = scmp.eq.s32.totalorder %s38_s14, 0 }
  0x46   : > { %s751_s10 = sshll.u32 %s230_s15, 4  ;;  %s794_s25 = sshll.u32 %s1133_s22, 8 }
  0x47   : > { %s1323_s6 = scalar_select %p41_p9, %s1125_s20, %s43_s13  }
  0x48   : > { %s1328_s24 = scalar_lea.hbm %s1450_s0, %s794_s25  ;;  %s234_s27 = scalar_lea.vmem [#allocation3], %s751_s10 }
  0x49   : > { %s244_s7 = sshll.u32 %s234_s27, 4  ;;  %p1332_p2 = pnand %p876_p3, %p52_p5  ;;  %s1336_s7 = int_to_ptr.vmem [resolvable:$true] %s244_s7 }
  0x4a   : > { %s1338_s11 = scalar_lea.sflag [#allocation4], %s230_s15  ;;  %s1021_s13 = scalar_lea.hbm %s1328_s24, 256 }
  0x4b   : > { %p1022_p11 = scmp.ne.s32.totalorder %s1328_s24, %s1021_s13  ;;  %p1023_p12 = pneg %p1332_p2 }
  0x4c   : > { %s1026_s25 = scalar_lea.hbm %s1450_s0, 512  ;;  %p1027_p4 = scmp.lt.u32.totalorder %s1328_s24, %s1450_s0 }
  0x4d   : > { %p1024_p0 = pnand %p1023_p12, %p1022_p11  ;;  %p1028_p13 = scmp.lt.u32.totalorder %s1026_s25, %s1021_s13 }
  0x4e   : > { %p1030_p10 = scmp.lt.u32.totalorder %s1021_s13, %s1328_s24 }
  0x4f   : > { %p1025_p1 = pneg %p1024_p0  ;;  %p1029_p6 = por %p1028_p13, %p1027_p4 }
  0x51   : > { %p1031_p3 = por %p1030_p10, %p1029_p6 }
  0x53   : > { %p1032_p5 = pnand %p1031_p3, %p1025_p1 }
  0x55   : > { %1035 = shalt.err (!%p1032_p5)
}
  0x56   : > { %s1036_s15 = scalar_lea.vmem %s1336_s7, 256  ;;  %s1143_s27 = smov [#allocation3]  }
  0x57   : > { %p1037_p9 = scmp.ne.s32.totalorder %s1336_s7, %s1036_s15  ;;  %s1041_s14 = sshll.u32 %s1143_s27, 4  ;;  %s1042_s14 = int_to_ptr.vmem [resolvable:$false] %s1041_s14 }
  0x58   : > { %s1043_s10 = scalar_lea.vmem %s1042_s14, 512  ;;  %p1044_p7 = scmp.lt.s32.totalorder %s1336_s7, %s1042_s14 }
  0x59   : > { %p1039_p11 = pnand %p1037_p9, %p1023_p12  ;;  %p1045_p4 = scmp.lt.s32.totalorder %s1043_s10, %s1036_s15 }
  0x5b   : > { %p1040_p0 = pneg %p1039_p11  ;;  %p1046_p13 = por %p1045_p4, %p1044_p7 }
  0x5d   : > { %p1047_p6 = pnand %p1046_p13, %p1040_p0 }
  0x5f   : > { %1050 = shalt.err (!%p1047_p6)
}
  0x60   : > { %s1144_s13 = smov 128   ;;  %s1145_s25 = smov 8  }
  0x61   : > { %869 = dma.hbm_to_vmem [thread:$0]  (!%p1332_p2), %s1328_s24, 256, %s1336_s7, %s1338_s11, %s1144_s13, %s1144_s13, %s1145_s25  }
  0x62   : > { %256 = sbr.rel (%p1235_p8) target bundleno = 598 (0x256), region = 40  ;;  %s1369_s16 = sand.u32 (!%p1235_p8), 1, %s1121_s19  }
  0x63   : > { %s756_s17 = sshll.u32 (!%p1235_p8), %s1369_s16, 4  ;;  %s259_s15 = scalar_lea.sflag (!%p1235_p8), [#allocation4], %s1369_s16 }
  0x64   : > { %s1375_s27 = scalar_lea.vmem (!%p1235_p8), [#allocation3], %s756_s17  ;;  %p1468_p7 = scmp.ne.s32.totalorder (!%p1235_p8), %s1462_s28, 0 }
  0x69   : > { %1104 = dma.done.wait (%p1468_p7), %s259_s15, 256  }
  0x6a   : > { %1106 = vsyncadd (%p1468_p7), %s259_s15, 4294967040  ;;  %p1469_p2 = scmp.ne.s32.totalorder %s1460_s26, 0 }
  0x6c   : > { %1108 = dma.done.wait (%p1469_p2), [#allocation7], 3072  }
  0x6d   : > { %1110 = vsyncadd (%p1469_p2), [#allocation7], 4294964224  ;;  %v1146_v0 = vmov 0.0   ;;  %v938_v1 = vld [vmem:[#allocation6 + $0x40] sm:$0xff]   ;;  %v940_v3 = vld [vmem:[#allocation6 + $0x48] sm:$0xff]   ;;  %vm1147_vm0 = vmmov 0  }
  0x6e   : > { %827 = vmatprep.subr.bf16.mxu1 %v1146_v0  ;;  %v939_v2 = vld [vmem:[#allocation6] sm:$0xff]   ;;  %796 = vmatprep.subr.bf16.mxu0 %v938_v1  ;;  %v941_v4 = vld [vmem:[#allocation6 + $0x8] sm:$0xff]   ;;  %v942_v5 = vld [vmem:[#allocation6 + $0x50] sm:$0xff]   ;;  %s296_s7 = scalar_lea.vmem [#allocation9], %s756_s17  ;;  %s795_s11 = sshll.u32 %s1129_s21, 8 }
  0x6f   : > { %797 = vmatpush3.bf16.msra.mxu0 %v939_v2  ;;  %v943_v6 = vld [vmem:[#allocation6 + $0x10] sm:$0xff]   ;;  %v944_v7 = vld [vmem:[#allocation6 + $0x58] sm:$0xff]   ;;  %v946_v9 = vld [vmem:[#allocation6 + $0x60] sm:$0xff]   ;;  %843 = vmatprep.mubr.msk.bf16.mxu1 %vm1147_vm0, %v1146_v0  ;;  %s640_s9 = sshll.u32 %s296_s7, 4  ;;  %s1401_s13 = scalar_lea.hbm %s1455_s5, %s795_s11  ;;  %s1396_s9 = int_to_ptr.vmem [resolvable:$true] %s640_s9 }
  0x70   : > { %798 = vmatprep.subr.bf16.mxu0 %v940_v3  ;;  %v945_v8 = vld [vmem:[#allocation6 + $0x18] sm:$0xff]   ;;  %v947_v10 = vld [vmem:[#allocation6 + $0x20] sm:$0xff]   ;;  %v948_v11 = vld [vmem:[#allocation6 + $0x68] sm:$0xff]   ;;  %s627_s25 = scalar_lea.sflag [#allocation5], %s1369_s16  ;;  %s1051_s17 = scalar_lea.vmem %s1396_s9, 256 }
  0x71   : > { %v949_v12 = vld [vmem:[#allocation6 + $0x28] sm:$0xff]   ;;  %v957_v14 = vld [vmem:[#allocation8] sm:$0xff]   ;;  %v950_v15 = vld [vmem:[#allocation6 + $0x70] sm:$0xff]   ;;  %p1052_p8 = scmp.ne.s32.totalorder %s1396_s9, %s1051_s17  ;;  %p1470_p12 = scmp.ne.s32.totalorder %s1466_s8, 0 }
  0x72   : > { %v956_v13 = vld [vmem:[%s1375_s27 + $0x4] ss:$8 sps:$4 sm:$0xff]   ;;  %828 = vmatpush3.bf16.msra.mxu1 %v957_v14  ;;  %v954_v22 = vld [vmem:[%s1375_s27] ss:$8 sps:$4 sm:$0xff]   ;;  %s1148_s21 = smov [#allocation9]  }
  0x73   : > { %799 = vmatpush3.bf16.msra.mxu0 %v941_v4  ;;  %489 = vmatprep.mubr.bf16.mxu0 %v956_v13  ;;  %v958_v16 = vld [vmem:[#allocation8 + $0x8] sm:$0xff]   ;;  %v951_v17 = vld [vmem:[#allocation6 + $0x30] sm:$0xff]   ;;  %v952_v18 = vld [vmem:[#allocation6 + $0x78] sm:$0xff]   ;;  %p1053_p1 = pnand %p1052_p8, %p1470_p12  ;;  %s1055_s15 = sshll.u32 %s1148_s21, 4  ;;  %s1056_s15 = int_to_ptr.vmem [resolvable:$false] %s1055_s15 }
  0x74   : > { %800 = vmatprep.subr.bf16.mxu0 %v942_v5  ;;  %829 = vmatprep.subr.bf16.mxu1 %v1146_v0  ;;  %v959_v19 = vld [vmem:[#allocation8 + $0x10] sm:$0xff]   ;;  %v953_v20 = vld [vmem:[#allocation6 + $0x38] sm:$0xff]   ;;  %v961_v23 = vld [vmem:[#allocation8 + $0x20] sm:$0xff]   ;;  %s1057_s27 = scalar_lea.vmem %s1056_s15, 512  ;;  %p1058_p3 = scmp.lt.s32.totalorder %s1396_s9, %s1056_s15 }
  0x75   : > { %v960_v21 = vld [vmem:[#allocation8 + $0x18] sm:$0xff]   ;;  %v962_v24 = vld [vmem:[#allocation8 + $0x28] sm:$0xff]   ;;  %v963_v25 = vld [vmem:[#allocation8 + $0x30] sm:$0xff]   ;;  %p1054_p10 = pneg %p1053_p1  ;;  %p1059_p5 = scmp.lt.s32.totalorder %s1057_s27, %s1051_s17 }
  0x76   : > { %830 = vmatpush3.bf16.msra.mxu1 %v958_v16  ;;  %v964_v26 = vld [vmem:[#allocation8 + $0x38] sm:$0xff]   ;;  %v760_v28 = vld [vmem:[%s1452_s2] ss:$0 sm:$0xff] }
  0x77   : > { %801 = vmatpush3.bf16.msra.mxu0 %v943_v6  ;;  %831 = vmatprep.subr.bf16.mxu1 %v1146_v0  ;;  %v779_v39 = vld [vmem:[%s1454_s4] ss:$0 sm:$0xff]  ;;  %p1060_p9 = por %p1059_p5, %p1058_p3 }
  0x78   : > { %802 = vmatprep.subr.bf16.mxu0 %v944_v7 }
  0x79   : > { %p1061_p11 = pnand %p1060_p9, %p1054_p10 }
  0x7a   : > { %832 = vmatpush3.bf16.msra.mxu1 %v959_v19 }
  0x7b   : > { %803 = vmatpush3.bf16.msra.mxu0 %v945_v8  ;;  %833 = vmatprep.subr.bf16.mxu1 %v1146_v0 }
  0x7c   : > { %804 = vmatprep.subr.bf16.mxu0 %v946_v9 }
  0x7e   : > { %834 = vmatpush3.bf16.msra.mxu1 %v960_v21 }
  0x7f   : > { %805 = vmatpush3.bf16.msra.mxu0 %v947_v10  ;;  %835 = vmatprep.subr.bf16.mxu1 %v1146_v0 }
  0x80   : > { %806 = vmatprep.subr.bf16.mxu0 %v948_v11 }
  0x82   : > { %836 = vmatpush3.bf16.msra.mxu1 %v961_v23 }
  0x83   : > { %807 = vmatpush3.bf16.msra.mxu0 %v949_v12  ;;  %837 = vmatprep.subr.bf16.mxu1 %v1146_v0 }
  0x84   : > { %808 = vmatprep.subr.bf16.mxu0 %v950_v15 }
  0x86   : > { %838 = vmatpush3.bf16.msra.mxu1 %v962_v24 }
  0x87   : > { %809 = vmatpush3.bf16.msra.mxu0 %v951_v17  ;;  %839 = vmatprep.subr.bf16.mxu1 %v1146_v0 }
  0x88   : > { %810 = vmatprep.subr.bf16.mxu0 %v952_v18 }
  0x8a   : > { %840 = vmatpush3.bf16.msra.mxu1 %v963_v25 }
  0x8b   : > { %811 = vmatpush3.bf16.msra.mxu0 %v953_v20  ;;  %841 = vmatprep.subr.bf16.mxu1 %v1146_v0 }
  0x8e   : > { %490 = vmatmul.mubr.bf16.vlgmr.msra.gmra.mrb[0].mxu0 %v954_v22  ;;  %842 = vmatpush3.bf16.msra.mxu1 %v964_v26 }
 0x161   : > { %v812_v27 = vpop.f32.mrb[0].mxu0 }
 0x162   : > { %v813_v29 = vpop.f32.mrb[1].mxu0 }
 0x163   : > { %v814_v30 = vadd.f32 %v813_v29, %v812_v27  ;;  %v815_v31 = vpop.f32.mrb[2].mxu0 }
 0x164   : > { %v816_v32 = vpop.f32.mrb[3].mxu0 }
 0x165   : > { %v498_v33 = vadd.f32 %v814_v30, %v760_v28  ;;  %v817_v34 = vadd.f32 %v816_v32, %v815_v31 }
 0x167   : > { %v499_v35 = vadd.f32 %v817_v34, %v760_v28  ;;  %v507_v36 = vmax.f32 %v498_v33, 0.0 }
 0x169   : > { %v508_v37 = vmax.f32 %v499_v35, 0.0 }
 0x16b   : > { %v509_v38 = vpack.c.bf16 %v508_v37, %v507_v36 }
 0x16d   : > { %844 = vmatmul.mubr.bf16.vlgmr.msra.gmra.mrb[0].mxu1 %v509_v38 }
 0x240   : > { %v615_v40 = vpop.f32.mrb[0].mxu1 }
 0x241   : > { %v616_v41 = vadd.f32 %v779_v39, %v615_v40  ;;  %v845_v42 = vpop.f32.mrb[1].mxu1 }
 0x242   : > { %v618_v43 = vpop.f32.mrb[2].mxu1 }
 0x243   : > { %v622_v44 = vmax.f32 %v616_v41, 0.0  ;;  %v619_v45 = vadd.f32 %v779_v39, %v618_v43  ;;  %v846_v46 = vpop.f32.mrb[3].mxu1 }
 0x245   : > { %624 = vst [vmem:[%s296_s7] sm:$0xff] %v622_v44  ;;  %v623_v47 = vmax.f32 %v619_v45, 0.0 }
 0x247   : > { %625 = vst [vmem:[%s296_s7 + $0x8] sm:$0xff] %v623_v47 }
 0x248   : > { %1064 = shalt.err (!%p1061_p11)
}
 0x249   : > { %s1065_s26 = scalar_lea.hbm %s1401_s13, 256  ;;  %s1069_s24 = scalar_lea.hbm %s1455_s5, 512 }
 0x24a   : > { %p1066_p0 = scmp.ne.s32.totalorder %s1401_s13, %s1065_s26  ;;  %p1070_p6 = scmp.lt.u32.totalorder %s1401_s13, %s1455_s5 }
 0x24b   : > { %p1071_p7 = scmp.lt.u32.totalorder %s1069_s24, %s1065_s26  ;;  %p1073_p8 = scmp.lt.u32.totalorder %s1065_s26, %s1401_s13 }
 0x24c   : > { %p1067_p4 = pnand %p1066_p0, %p1470_p12 }
 0x24d   : > { %p1072_p2 = por %p1071_p7, %p1070_p6 }
 0x24e   : > { %p1068_p13 = pneg %p1067_p4 }
 0x24f   : > { %p1074_p1 = por %p1073_p8, %p1072_p2 }
 0x251   : > { %p1075_p10 = pnand %p1074_p1, %p1068_p13 }
 0x253   : > { %1078 = shalt.err (!%p1075_p10)
}
 0x254   : > { %s1149_s14 = smov 128   ;;  %s1150_s10 = smov 8  }
 0x255   : > { %857 = dma.vmem_to_hbm [thread:$0]  (%p1470_p12), %s1396_s9, 256, %s1401_s13, %s627_s25, %s1149_s14, %s1149_s14, %s1150_s10  }
 0x256 PF: > { %s655_s17 = sand.u32 1, %s1117_s18   ;;  %p1471_p3 = scmp.ne.s32.totalorder %s1463_s29, 0 }
 0x257   : > { %p1472_p5 = scmp.ge.s32.totalorder %s1137_s23, 2  ;;  %s656_s21 = scalar_lea.sflag [#allocation5], %s655_s17 }
 0x259   : > { %p871_p9 = pnand %p1472_p5, %p1471_p3 }
 0x25b   : > { %1112 = dma.done.wait (!%p871_p9), %s656_s21, 256  }
 0x25c   : > { %1114 = vsyncadd (!%p871_p9), %s656_s21, 4294967040  ;;  %s22_s23 = sadd.s32 1, %s1137_s23   ;;  %s1473_s18 = smov %s1121_s19 }
 0x25d   : > { %p19_p11 = scmp.ge.s32.totalorder %s22_s23, 4   ;;  %s1474_s19 = smov %s1125_s20 }
 0x25e   : > { %s1475_s20 = smov %s1323_s6  ;;  %s1476_s21 = smov %s1133_s22 }
 0x25f   : > { %s1477_s22 = smov %s1479_s12  ;;  %21 = sbr.rel (!%p19_p11) target bundleno = 7 (0x7), region = 102 }
 0x266   :  { %661 = vsyncpa [#allocation4], 1 }
 0x267   :  { %663 = vsyncpa [#allocation4 + $0x1], 1 }
 0x268   :  { %664 = vsyncpa [#allocation7], 1 }
 0x269   :  { %665 = vsyncpa [#allocation5], 1 }
 0x26a   :  { %667 = vsyncpa [#allocation5 + $0x1], 1 }

// kernel: tpu_custom_call.1
= control target key start
LH: loop header
LB: loop body
LE: loop exit
PB: predicated region body
PF: predicated region fallthrough
CT: control target
= control target key end

     0   :  { %10 = vsyncpa [#allocation4], 0  ;;  %s1450_s0 = inlined_call_operand.hbm [shape: bf16[32,256], index: 0, kind: input, shape index: {}]   ;;  %s1451_s1 = inlined_call_operand.hbm [shape: bf16[256,128], index: 1, kind: input, shape index: {}]   ;;  %s1452_s2 = inlined_call_operand.vmem [shape: f32[1,128], index: 2, kind: input, shape index: {}]   ;;  %s1453_s3 = inlined_call_operand.hbm [shape: bf16[128,128], index: 3, kind: input, shape index: {}]   ;;  %s1454_s4 = inlined_call_operand.vmem [shape: f32[1,128], index: 4, kind: input, shape index: {}]   ;;  %s1455_s5 = inlined_call_operand.hbm [shape: f32[32,128], index: 5, kind: output, shape index: {}]  }
   0x1   :  { %12 = vsyncpa [#allocation4 + $0x1], 0 }
   0x2   :  { %13 = vsyncpa [#allocation7], 0 }
   0x3   :  { %14 = vsyncpa [#allocation5], 0 }
   0x4   :  { %16 = vsyncpa [#allocation5 + $0x1], 0  ;;  %s1181_s18 = smov 0   ;;  %s1183_s19 = smov 0  }
   0x5   :  { %s1185_s20 = smov 0   ;;  %s1187_s21 = smov 0  }
   0x6   :  { %s1189_s22 = smov 0   ;;  %s1191_s23 = smov 0  }
   0x7 LB: > { %s745_s24 = sadd.s32 4294967295, %s1137_s23   ;;  %s746_s25 = sadd.s32 4294967294, %s1137_s23   ;;  %s1137_s23 = sphi %s1191_s23, %s22_s23   ;;  %s1133_s22 = sphi %s1189_s22, %s1477_s22   ;;  %s1129_s21 = sphi %s1187_s21, %s1476_s21   ;;  %s1125_s20 = sphi %s1185_s20, %s1475_s20   ;;  %s1121_s19 = sphi %s1183_s19, %s1474_s19   ;;  %s1117_s18 = sphi %s1181_s18, %s1473_s18  }
   0x8   : > { %p56_p0 = scmp.ne.s32.totalorder %s1121_s19, %s1117_s18  ;;  %p1215_p1 = scmp.eq.s32.totalorder %s745_s24, 0 }
   0x9   : > { %p1219_p2 = scmp.eq.s32.totalorder %s745_s24, 1  ;;  %p175_p3 = scmp.eq.s32.totalorder %s746_s25, 1 }
   0xa   : > { %s1460_s26 = scalar_select %p1215_p1, 1, 0 }
   0xb   : > { %p1225_p4 = por %p1215_p1, %p56_p0  ;;  %p747_p5 = scmp.ge.s32.totalorder %s1137_s23, 1 }
   0xc   : > { %p1230_p6 = por %p175_p3, %p56_p0  ;;  %p182_p7 = scmp.lt.s32.totalorder %s1137_s23, 3 }
   0xd   : > { %s1462_s28 = scalar_select %p1225_p4, 1, 0 }
   0xe   : > { %s1463_s29 = scalar_select %p1230_p6, 1, 0 }
   0xf   : > { %p1235_p8 = pnand %p747_p5, %p182_p7  ;;  %s1139_s6 = smov [#allocation6]  }
  0x10   : > { %s197_s7 = sshll.u32 %s1139_s6, 4  ;;  %s1140_s9 = smov [#allocation8]   ;;  %s1239_s7 = int_to_ptr.vmem [resolvable:$true] %s197_s7 }
  0x11   : > { %p859_p9 = pneg %p1235_p8  ;;  %s213_s10 = sshll.u32 %s1140_s9, 4  ;;  %s1250_s10 = int_to_ptr.vmem [resolvable:$true] %s213_s10 }
  0x12   : > { %s965_s13 = scalar_lea.hbm %s1451_s1, 2048 }
  0x13   : > { %p1246_p11 = pnand %p859_p9, %p1215_p1  ;;  %p966_p12 = scmp.ne.s32.totalorder %s1451_s1, %s965_s13 }
  0x14   : > { %p972_p5 = scmp.lt.u32.totalorder %s965_s13, %s1451_s1 }
  0x15   : > { %p967_p13 = pneg %p1246_p11 }
  0x17   : > { %p968_p0 = pnand %p967_p13, %p966_p12 }
  0x19   : > { %p969_p3 = pneg %p968_p0 }
  0x1b   : > { %p974_p7 = pnand %p972_p5, %p969_p3 }
  0x1d   : > { %977 = shalt.err (!%p974_p7)
}
  0x1e   : > { %s978_s24 = scalar_lea.vmem %s1239_s7, 2048  ;;  %p986_p1 = scmp.lt.s32.totalorder %s1239_s7, %s1239_s7 }
  0x1f   : > { %p979_p9 = scmp.ne.s32.totalorder %s1239_s7, %s978_s24  ;;  %p987_p12 = scmp.lt.s32.totalorder %s978_s24, %s978_s24 }
  0x21   : > { %p981_p10 = pnand %p979_p9, %p967_p13  ;;  %p988_p0 = por %p987_p12, %p986_p1 }
  0x23   : > { %p982_p6 = pneg %p981_p10 }
  0x25   : > { %p989_p4 = pnand %p988_p0, %p982_p6 }
  0x27   : > { %992 = shalt.err (!%p989_p4)
}
  0x28   : > { %s1141_s25 = smov 64   ;;  %s1142_s6 = smov 4  }
  0x29   : > { %862 = dma.hbm_to_vmem [thread:$0]  (!%p1246_p11), %s1451_s1, 2048, %s1239_s7, [#allocation7], %s1141_s25, %s1141_s25, %s1142_s6  }
  0x2a   : > { %s993_s14 = scalar_lea.hbm %s1453_s3, 1024 }
  0x2b   : > { %p994_p1 = scmp.ne.s32.totalorder %s1453_s3, %s993_s14  ;;  %p1000_p10 = scmp.lt.u32.totalorder %s993_s14, %s1453_s3 }
  0x2d   : > { %p996_p4 = pnand %p994_p1, %p967_p13 }
  0x2f   : > { %p997_p6 = pneg %p996_p4 }
  0x31   : > { %p1002_p3 = pnand %p1000_p10, %p997_p6 }
  0x33   : > { %1005 = shalt.err (!%p1002_p3)
}
  0x34   : > { %s1006_s7 = scalar_lea.vmem %s1250_s10, 1024  ;;  %p1014_p12 = scmp.lt.s32.totalorder %s1250_s10, %s1250_s10 }
  0x35   : > { %p1007_p5 = scmp.ne.s32.totalorder %s1250_s10, %s1006_s7  ;;  %p1015_p0 = scmp.lt.s32.totalorder %s1006_s7, %s1006_s7 }
  0x37   : > { %p1009_p7 = pnand %p1007_p5, %p967_p13  ;;  %p1016_p1 = por %p1015_p0, %p1014_p12 }
  0x39   : > { %p1010_p9 = pneg %p1009_p7 }
  0x3b   : > { %p1017_p4 = pnand %p1016_p1, %p1010_p9 }
  0x3d   : > { %1020 = shalt.err (!%p1017_p4)
}
  0x3e   : > { %865 = dma.hbm_to_vmem [thread:$0]  (!%p1246_p11), %s1453_s3, 1024, %s1250_s10, [#allocation7], %s1141_s25, %s1141_s25, %s1142_s6  }
  0x3f   : > { %s34_s12 = sadd.s32 1, %s1133_s22  ;;  %s43_s13 = sadd.s32 1, %s1125_s20 }
  0x40   : > { %p36_p13 = scmp.ge.s32.totalorder %s34_s12, 2  ;;  %p50_p6 = scmp.ne.s32.totalorder %s1125_s20, %s1121_s19 }
  0x41   : > { %p51_p10 = scmp.eq.s32.totalorder %s1137_s23, 0  ;;  %p876_p3 = scmp.lt.s32.totalorder %s1137_s23, 2 }
  0x42   : > { %s1479_s12 = smov (%p36_p13, %s34_s12), 0  ;;  %p1314_p7 = por %p1219_p2, %p50_p6 }
  0x43   : > { %p52_p5 = por %p51_p10, %p50_p6  ;;  %s38_s14 = ssub.s32 %s1133_s22, %s1479_s12 }
  0x44   : > { %s1466_s8 = scalar_select %p1314_p7, 1, 0 }
  0x45   : > { %s230_s15 = sand.u32 1, %s1125_s20   ;;  %p41_p9 = scmp.eq.s32.totalorder %s38_s14, 0 }
  0x46   : > { %s751_s10 = sshll.u32 %s230_s15, 4  ;;  %s794_s25 = sshll.u32 %s1133_s22, 8 }
  0x47   : > { %s1323_s6 = scalar_select %p41_p9, %s1125_s20, %s43_s13  }
  0x48   : > { %s1328_s24 = scalar_lea.hbm %s1450_s0, %s794_s25  ;;  %s234_s27 = scalar_lea.vmem [#allocation3], %s751_s10 }
  0x49   : > { %s244_s7 = sshll.u32 %s234_s27, 4  ;;  %p1332_p2 = pnand %p876_p3, %p52_p5  ;;  %s1336_s7 = int_to_ptr.vmem [resolvable:$true] %s244_s7 }
  0x4a   : > { %s1338_s11 = scalar_lea.sflag [#allocation4], %s230_s15  ;;  %s1021_s13 = scalar_lea.hbm %s1328_s24, 256 }
  0x4b   : > { %p1022_p11 = scmp.ne.s32.totalorder %s1328_s24, %s1021_s13  ;;  %p1023_p12 = pneg %p1332_p2 }
  0x4c   : > { %s1026_s25 = scalar_lea.hbm %s1450_s0, 512  ;;  %p1027_p4 = scmp.lt.u32.totalorder %s1328_s24, %s1450_s0 }
  0x4d   : > { %p1024_p0 = pnand %p1023_p12, %p1022_p11  ;;  %p1028_p13 = scmp.lt.u32.totalorder %s1026_s25, %s1021_s13 }
  0x4e   : > { %p1030_p10 = scmp.lt.u32.totalorder %s1021_s13, %s1328_s24 }
  0x4f   : > { %p1025_p1 = pneg %p1024_p0  ;;  %p1029_p6 = por %p1028_p13, %p1027_p4 }
  0x51   : > { %p1031_p3 = por %p1030_p10, %p1029_p6 }
  0x53   : > { %p1032_p5 = pnand %p1031_p3, %p1025_p1 }
  0x55   : > { %1035 = shalt.err (!%p1032_p5)
}
  0x56   : > { %s1036_s15 = scalar_lea.vmem %s1336_s7, 256  ;;  %s1143_s27 = smov [#allocation3]  }
  0x57   : > { %p1037_p9 = scmp.ne.s32.totalorder %s1336_s7, %s1036_s15  ;;  %s1041_s14 = sshll.u32 %s1143_s27, 4  ;;  %s1042_s14 = int_to_ptr.vmem [resolvable:$false] %s1041_s14 }
  0x58   : > { %s1043_s10 = scalar_lea.vmem %s1042_s14, 512  ;;  %p1044_p7 = scmp.lt.s32.totalorder %s1336_s7, %s1042_s14 }
  0x59   : > { %p1039_p11 = pnand %p1037_p9, %p1023_p12  ;;  %p1045_p4 = scmp.lt.s32.totalorder %s1043_s10, %s1036_s15 }
  0x5b   : > { %p1040_p0 = pneg %p1039_p11  ;;  %p1046_p13 = por %p1045_p4, %p1044_p7 }
  0x5d   : > { %p1047_p6 = pnand %p1046_p13, %p1040_p0 }
  0x5f   : > { %1050 = shalt.err (!%p1047_p6)
}
  0x60   : > { %s1144_s13 = smov 128   ;;  %s1145_s25 = smov 8  }
  0x61   : > { %869 = dma.hbm_to_vmem [thread:$0]  (!%p1332_p2), %s1328_s24, 256, %s1336_s7, %s1338_s11, %s1144_s13, %s1144_s13, %s1145_s25  }
  0x62   : > { %256 = sbr.rel (%p1235_p8) target bundleno = 598 (0x256), region = 40  ;;  %s1369_s16 = sand.u32 (!%p1235_p8), 1, %s1121_s19  }
  0x63   : > { %s756_s17 = sshll.u32 (!%p1235_p8), %s1369_s16, 4  ;;  %s259_s15 = scalar_lea.sflag (!%p1235_p8), [#allocation4], %s1369_s16 }
  0x64   : > { %s1375_s27 = scalar_lea.vmem (!%p1235_p8), [#allocation3], %s756_s17  ;;  %p1468_p7 = scmp.ne.s32.totalorder (!%p1235_p8), %s1462_s28, 0 }
  0x69   : > { %1104 = dma.done.wait (%p1468_p7), %s259_s15, 256  }
  0x6a   : > { %1106 = vsyncadd (%p1468_p7), %s259_s15, 4294967040  ;;  %p1469_p2 = scmp.ne.s32.totalorder %s1460_s26, 0 }
  0x6c   : > { %1108 = dma.done.wait (%p1469_p2), [#allocation7], 3072  }
  0x6d   : > { %1110 = vsyncadd (%p1469_p2), [#allocation7], 4294964224  ;;  %v1146_v0 = vmov 0.0   ;;  %v938_v1 = vld [vmem:[#allocation6 + $0x40] sm:$0xff]   ;;  %v940_v3 = vld [vmem:[#allocation6 + $0x48] sm:$0xff]   ;;  %vm1147_vm0 = vmmov 0  }
  0x6e   : > { %827 = vmatprep.subr.bf16.mxu1 %v1146_v0  ;;  %v939_v2 = vld [vmem:[#allocation6] sm:$0xff]   ;;  %796 = vmatprep.subr.bf16.mxu0 %v938_v1  ;;  %v941_v4 = vld [vmem:[#allocation6 + $0x8] sm:$0xff]   ;;  %v942_v5 = vld [vmem:[#allocation6 + $0x50] sm:$0xff]   ;;  %s296_s7 = scalar_lea.vmem [#allocation9], %s756_s17  ;;  %s795_s11 = sshll.u32 %s1129_s21, 8 }
  0x6f   : > { %797 = vmatpush3.bf16.msra.mxu0 %v939_v2  ;;  %v943_v6 = vld [vmem:[#allocation6 + $0x10] sm:$0xff]   ;;  %v944_v7 = vld [vmem:[#allocation6 + $0x58] sm:$0xff]   ;;  %v946_v9 = vld [vmem:[#allocation6 + $0x60] sm:$0xff]   ;;  %843 = vmatprep.mubr.msk.bf16.mxu1 %vm1147_vm0, %v1146_v0  ;;  %s640_s9 = sshll.u32 %s296_s7, 4  ;;  %s1401_s13 = scalar_lea.hbm %s1455_s5, %s795_s11  ;;  %s1396_s9 = int_to_ptr.vmem [resolvable:$true] %s640_s9 }
  0x70   : > { %798 = vmatprep.subr.bf16.mxu0 %v940_v3  ;;  %v945_v8 = vld [vmem:[#allocation6 + $0x18] sm:$0xff]   ;;  %v947_v10 = vld [vmem:[#allocation6 + $0x20] sm:$0xff]   ;;  %v948_v11 = vld [vmem:[#allocation6 + $0x68] sm:$0xff]   ;;  %s627_s25 = scalar_lea.sflag [#allocation5], %s1369_s16  ;;  %s1051_s17 = scalar_lea.vmem %s1396_s9, 256 }
  0x71   : > { %v949_v12 = vld [vmem:[#allocation6 + $0x28] sm:$0xff]   ;;  %v957_v14 = vld [vmem:[#allocation8] sm:$0xff]   ;;  %v950_v15 = vld [vmem:[#allocation6 + $0x70] sm:$0xff]   ;;  %p1052_p8 = scmp.ne.s32.totalorder %s1396_s9, %s1051_s17  ;;  %p1470_p12 = scmp.ne.s32.totalorder %s1466_s8, 0 }
  0x72   : > { %v956_v13 = vld [vmem:[%s1375_s27 + $0x4] ss:$8 sps:$4 sm:$0xff]   ;;  %828 = vmatpush3.bf16.msra.mxu1 %v957_v14  ;;  %v954_v22 = vld [vmem:[%s1375_s27] ss:$8 sps:$4 sm:$0xff]   ;;  %s1148_s21 = smov [#allocation9]  }
  0x73   : > { %799 = vmatpush3.bf16.msra.mxu0 %v941_v4  ;;  %489 = vmatprep.mubr.bf16.mxu0 %v956_v13  ;;  %v958_v16 = vld [vmem:[#allocation8 + $0x8] sm:$0xff]   ;;  %v951_v17 = vld [vmem:[#allocation6 + $0x30] sm:$0xff]   ;;  %v952_v18 = vld [vmem:[#allocation6 + $0x78] sm:$0xff]   ;;  %p1053_p1 = pnand %p1052_p8, %p1470_p12  ;;  %s1055_s15 = sshll.u32 %s1148_s21, 4  ;;  %s1056_s15 = int_to_ptr.vmem [resolvable:$false] %s1055_s15 }
  0x74   : > { %800 = vmatprep.subr.bf16.mxu0 %v942_v5  ;;  %829 = vmatprep.subr.bf16.mxu1 %v1146_v0  ;;  %v959_v19 = vld [vmem:[#allocation8 + $0x10] sm:$0xff]   ;;  %v953_v20 = vld [vmem:[#allocation6 + $0x38] sm:$0xff]   ;;  %v961_v23 = vld [vmem:[#allocation8 + $0x20] sm:$0xff]   ;;  %s1057_s27 = scalar_lea.vmem %s1056_s15, 512  ;;  %p1058_p3 = scmp.lt.s32.totalorder %s1396_s9, %s1056_s15 }
  0x75   : > { %v960_v21 = vld [vmem:[#allocation8 + $0x18] sm:$0xff]   ;;  %v962_v24 = vld [vmem:[#allocation8 + $0x28] sm:$0xff]   ;;  %v963_v25 = vld [vmem:[#allocation8 + $0x30] sm:$0xff]   ;;  %p1054_p10 = pneg %p1053_p1  ;;  %p1059_p5 = scmp.lt.s32.totalorder %s1057_s27, %s1051_s17 }
  0x76   : > { %830 = vmatpush3.bf16.msra.mxu1 %v958_v16  ;;  %v964_v26 = vld [vmem:[#allocation8 + $0x38] sm:$0xff]   ;;  %v760_v28 = vld [vmem:[%s1452_s2] ss:$0 sm:$0xff] }
  0x77   : > { %801 = vmatpush3.bf16.msra.mxu0 %v943_v6  ;;  %831 = vmatprep.subr.bf16.mxu1 %v1146_v0  ;;  %v779_v39 = vld [vmem:[%s1454_s4] ss:$0 sm:$0xff]  ;;  %p1060_p9 = por %p1059_p5, %p1058_p3 }
  0x78   : > { %802 = vmatprep.subr.bf16.mxu0 %v944_v7 }
  0x79   : > { %p1061_p11 = pnand %p1060_p9, %p1054_p10 }
  0x7a   : > { %832 = vmatpush3.bf16.msra.mxu1 %v959_v19 }
  0x7b   : > { %803 = vmatpush3.bf16.msra.mxu0 %v945_v8  ;;  %833 = vmatprep.subr.bf16.mxu1 %v1146_v0 }
  0x7c   : > { %804 = vmatprep.subr.bf16.mxu0 %v946_v9 }
  0x7e   : > { %834 = vmatpush3.bf16.msra.mxu1 %v960_v21 }
  0x7f   : > { %805 = vmatpush3.bf16.msra.mxu0 %v947_v10  ;;  %835 = vmatprep.subr.bf16.mxu1 %v1146_v0 }
  0x80   : > { %806 = vmatprep.subr.bf16.mxu0 %v948_v11 }
  0x82   : > { %836 = vmatpush3.bf16.msra.mxu1 %v961_v23 }
  0x83   : > { %807 = vmatpush3.bf16.msra.mxu0 %v949_v12  ;;  %837 = vmatprep.subr.bf16.mxu1 %v1146_v0 }
  0x84   : > { %808 = vmatprep.subr.bf16.mxu0 %v950_v15 }
  0x86   : > { %838 = vmatpush3.bf16.msra.mxu1 %v962_v24 }
  0x87   : > { %809 = vmatpush3.bf16.msra.mxu0 %v951_v17  ;;  %839 = vmatprep.subr.bf16.mxu1 %v1146_v0 }
  0x88   : > { %810 = vmatprep.subr.bf16.mxu0 %v952_v18 }
  0x8a   : > { %840 = vmatpush3.bf16.msra.mxu1 %v963_v25 }
  0x8b   : > { %811 = vmatpush3.bf16.msra.mxu0 %v953_v20  ;;  %841 = vmatprep.subr.bf16.mxu1 %v1146_v0 }
  0x8e   : > { %490 = vmatmul.mubr.bf16.vlgmr.msra.gmra.mrb[0].mxu0 %v954_v22  ;;  %842 = vmatpush3.bf16.msra.mxu1 %v964_v26 }
 0x161   : > { %v812_v27 = vpop.f32.mrb[0].mxu0 }
 0x162   : > { %v813_v29 = vpop.f32.mrb[1].mxu0 }
 0x163   : > { %v814_v30 = vadd.f32 %v813_v29, %v812_v27  ;;  %v815_v31 = vpop.f32.mrb[2].mxu0 }
 0x164   : > { %v816_v32 = vpop.f32.mrb[3].mxu0 }
 0x165   : > { %v498_v33 = vadd.f32 %v814_v30, %v760_v28  ;;  %v817_v34 = vadd.f32 %v816_v32, %v815_v31 }
 0x167   : > { %v499_v35 = vadd.f32 %v817_v34, %v760_v28  ;;  %v507_v36 = vmax.f32 %v498_v33, 0.0 }
 0x169   : > { %v508_v37 = vmax.f32 %v499_v35, 0.0 }
 0x16b   : > { %v509_v38 = vpack.c.bf16 %v508_v37, %v507_v36 }
 0x16d   : > { %844 = vmatmul.mubr.bf16.vlgmr.msra.gmra.mrb[0].mxu1 %v509_v38 }
 0x240   : > { %v615_v40 = vpop.f32.mrb[0].mxu1 }
 0x241   : > { %v616_v41 = vadd.f32 %v779_v39, %v615_v40  ;;  %v845_v42 = vpop.f32.mrb[1].mxu1 }
 0x242   : > { %v618_v43 = vpop.f32.mrb[2].mxu1 }
 0x243   : > { %v622_v44 = vmax.f32 %v616_v41, 0.0  ;;  %v619_v45 = vadd.f32 %v779_v39, %v618_v43  ;;  %v846_v46 = vpop.f32.mrb[3].mxu1 }
 0x245   : > { %624 = vst [vmem:[%s296_s7] sm:$0xff] %v622_v44  ;;  %v623_v47 = vmax.f32 %v619_v45, 0.0 }
 0x247   : > { %625 = vst [vmem:[%s296_s7 + $0x8] sm:$0xff] %v623_v47 }
 0x248   : > { %1064 = shalt.err (!%p1061_p11)
}
 0x249   : > { %s1065_s26 = scalar_lea.hbm %s1401_s13, 256  ;;  %s1069_s24 = scalar_lea.hbm %s1455_s5, 512 }
 0x24a   : > { %p1066_p0 = scmp.ne.s32.totalorder %s1401_s13, %s1065_s26  ;;  %p1070_p6 = scmp.lt.u32.totalorder %s1401_s13, %s1455_s5 }
 0x24b   : > { %p1071_p7 = scmp.lt.u32.totalorder %s1069_s24, %s1065_s26  ;;  %p1073_p8 = scmp.lt.u32.totalorder %s1065_s26, %s1401_s13 }
 0x24c   : > { %p1067_p4 = pnand %p1066_p0, %p1470_p12 }
 0x24d   : > { %p1072_p2 = por %p1071_p7, %p1070_p6 }
 0x24e   : > { %p1068_p13 = pneg %p1067_p4 }
 0x24f   : > { %p1074_p1 = por %p1073_p8, %p1072_p2 }
 0x251   : > { %p1075_p10 = pnand %p1074_p1, %p1068_p13 }
 0x253   : > { %1078 = shalt.err (!%p1075_p10)
}
 0x254   : > { %s1149_s14 = smov 128   ;;  %s1150_s10 = smov 8  }
 0x255   : > { %857 = dma.vmem_to_hbm [thread:$0]  (%p1470_p12), %s1396_s9, 256, %s1401_s13, %s627_s25, %s1149_s14, %s1149_s14, %s1150_s10  }
 0x256 PF: > { %s655_s17 = sand.u32 1, %s1117_s18   ;;  %p1471_p3 = scmp.ne.s32.totalorder %s1463_s29, 0 }
 0x257   : > { %p1472_p5 = scmp.ge.s32.totalorder %s1137_s23, 2  ;;  %s656_s21 = scalar_lea.sflag [#allocation5], %s655_s17 }
 0x259   : > { %p871_p9 = pnand %p1472_p5, %p1471_p3 }
 0x25b   : > { %1112 = dma.done.wait (!%p871_p9), %s656_s21, 256  }
 0x25c   : > { %1114 = vsyncadd (!%p871_p9), %s656_s21, 4294967040  ;;  %s22_s23 = sadd.s32 1, %s1137_s23   ;;  %s1473_s18 = smov %s1121_s19 }
 0x25d   : > { %p19_p11 = scmp.ge.s32.totalorder %s22_s23, 4   ;;  %s1474_s19 = smov %s1125_s20 }
 0x25e   : > { %s1475_s20 = smov %s1323_s6  ;;  %s1476_s21 = smov %s1133_s22 }
 0x25f   : > { %s1477_s22 = smov %s1479_s12  ;;  %21 = sbr.rel (!%p19_p11) target bundleno = 7 (0x7), region = 102 }
 0x266   :  { %661 = vsyncpa [#allocation4], 1 }
 0x267   :  { %663 = vsyncpa [#allocation4 + $0x1], 1 }
 0x268   :  { %664 = vsyncpa [#allocation7], 1 }
 0x269   :  { %665 = vsyncpa [#allocation5], 1 }
 0x26a   :  { %667 = vsyncpa [#allocation5 + $0x1], 1 }

</bundles_post_ra>
